<compile_context>
chip_gen: v5e
topology: v5e:2x2
jax: 0.10.0
libtpu: 0.0.40
codegen_flags: <defaults>
</compile_context>

<pallas_src>
import math

import jax
import jax.numpy as jnp
from jax import lax
from jax.experimental import pallas as pl
from jax.experimental.pallas import tpu as pltpu

IN_FEATURES = 32                                   # base_model.fc.in_features
OUTPUT_DIM = 128                                   # SimilarityNet(output_dim=128)
N_HEAD_COLS = OUTPUT_DIM + 1 + 2                   # [ fc(128) | theta(1) | side(2) ]
PACK = ((N_HEAD_COLS + 127) // 128) * 128          # lane-dense packed output width (256)


def _pick_hw_chunk(HW, target):
    """Largest multiple of 128 that divides HW and is <= target, else HW (one full chunk)."""
    if HW <= target:
        return HW
    c = (min(target, HW) // 128) * 128
    while c >= 128:
        if HW % c == 0:
            return c
        c -= 128
    return HW                                      # HW not a multiple of 128: single full chunk


def _pick_tiling(BC, HW, C, itemsize, max_rows, hw_chunk_arg, target_block_bytes):
    """Choose (tile_bc, hw_chunk, n_btiles, n_hw) so no wrapper-side padding is ever needed."""
    sub_mult = max(8, 32 // itemsize)              # f32: 8, bf16: 16, int8/fp8: 32 sublane quantum
    row_quant = (C * sub_mult) // math.gcd(C, sub_mult)   # lcm(C, sub_mult): whole images + packing
    cap = max(row_quant, (max_rows // row_quant) * row_quant)
    tile_bc = BC if BC <= cap else cap             # full-extent sublane block is always legal

    if hw_chunk_arg is None:
        hw_target = max(128, target_block_bytes // max(1, tile_bc * itemsize))
    else:
        hw_target = max(128, int(hw_chunk_arg))
    hw_chunk = _pick_hw_chunk(HW, hw_target)

    # Expose >=2 batch tiles (v7x has 2 TensorCores) when it keeps blocks >= ~1 MiB.
    if BC <= cap:
        half = ((BC + 1) // 2 + row_quant - 1) // row_quant * row_quant
        if half < BC and half * hw_chunk * itemsize >= (1 << 20):
            tile_bc = half

    n_btiles = -(-BC // tile_bc)
    n_hw = HW // hw_chunk                          # exact by construction
    return tile_bc, hw_chunk, n_btiles, n_hw


def _make_kernel(C, BC, tile_bc, ragged_rows):
    tile_b = tile_bc // C

    def kernel(img_ref,                            # (tile_bc, hw_chunk) image rows (b*C + c)
               wexp_ref,                           # (tile_bc, F)  w_base tiled, 1/(H*W) folded in
               bb_ref,                             # (1, F)        backbone bias
               wh_ref,                             # (F, PACK)     fused head weights
               bh_ref,                             # (1, PACK)     fused head biases
               out_ref,                            # (1, tile_b, PACK) packed output slab
               acc_ref):                           # (tile_bc, 1)  GAP row-sum accumulator (VMEM)
        hw = pl.program_id(1)

        @pl.when(hw == 0)
        def _():
            acc_ref[...] = jnp.zeros_like(acc_ref)

        # Accumulate GAP row sums over the H*W chunks (f32 accumulation from any input dtype).
        x = img_ref[...].astype(jnp.float32)
        if ragged_rows:
            # Last batch tile reads past B*C rows: the out-of-bounds rows are unspecified, so
            # zero them before accumulating (cheap VPU select; no wrapper-side padding copy).
            r0 = pl.program_id(0) * tile_bc
            ridx = lax.broadcasted_iota(jnp.int32, (tile_bc, 1), 0) + r0
            x = jnp.where(ridx < BC, x, 0.0)
        acc_ref[...] += jnp.sum(x, axis=-1, keepdims=True)

        @pl.when(hw == pl.num_programs(1) - 1)
        def _():
            pooled = acc_ref[...]                                    # (tile_bc, 1) row sums
            # 1/(H*W) is folded into wexp; the one-hot regroup matrix is built in-kernel from
            # two iota compares (no HBM input, no in-kernel reshape/relayout), then one MXU dot
            # turns per-(b,c) contributions into per-batch features.
            contrib = pooled * wexp_ref[...]                         # (tile_bc, F)
            r = lax.broadcasted_iota(jnp.int32, (tile_b, tile_bc), 0)
            q = lax.broadcasted_iota(jnp.int32, (tile_b, tile_bc), 1)
            sel = ((q >= r * C) & (q < (r + 1) * C)).astype(jnp.float32)
            feat = jnp.dot(sel, contrib, preferred_element_type=jnp.float32) + bb_ref[...]
            feat = jnp.maximum(feat, 0.0)            # backbone ReLU; dropout == identity (eval)

            # One fused lane-dense MXU matmul for all three heads.
            z = jnp.dot(feat, wh_ref[...],
                        preferred_element_type=jnp.float32) + bh_ref[...]   # (tile_b, PACK)
            col = lax.broadcasted_iota(jnp.int32, z.shape, 1)
            # Tanh on fc + theta columns; side columns are RAW logits (fc_side_act is defined in
            # the module but never applied in forward()); pad columns are 0 and sliced off.
            out_ref[0] = jnp.where(col < OUTPUT_DIM + 1, jnp.tanh(z), z)

    return kernel


def _simnet_packed(image, params, *, hw_chunk=None, max_rows=512,
                   target_block_bytes=4 << 20, core_parallel=False):
    """Run the fused kernel over the full batch; returns (B, PACK) packed outputs.

    target_block_bytes sizes the per-grid-step image block: ~2 MiB for v5e, ~4 MiB for v6e
    (default), ~8 MiB for v7x. core_parallel=True requests CORE_PARALLEL on the batch-tile axis
    (2-TensorCore v7x chips)."""
    B, C, H, W = image.shape
    HW = H * W
    BC = B * C
    F = params["w_base"].shape[1]
    itemsize = jnp.dtype(image.dtype).itemsize

    tile_bc, hw_blk, n_btiles, n_hw = _pick_tiling(
        BC, HW, C, itemsize, max_rows, hw_chunk, target_block_bytes)
    tile_b = tile_bc // C
    ragged_rows = (BC % tile_bc) != 0

    # Dense 2-D image layout: row = b*C + c, cols = flattened spatial (lane axis).
    # Contiguous reshape == view: no extra HBM traffic, and no jnp.pad copy anywhere.
    img2d = image.reshape(BC, HW)

    f32 = jnp.float32
    # Backbone weight tiled over the batch tile, with the GAP mean (1/HW) folded in.
    w_exp = jnp.tile(params["w_base"].astype(f32) / float(HW), (tile_b, 1))     # (tile_bc, F)
    b_base = params["b_base"].astype(f32).reshape(1, F)

    # Fused head weights: [ w_fc | w_theta | w_side | zero-pad ] -> (F, PACK)
    w_heads = jnp.concatenate([params["w_fc"].astype(f32),
                               params["w_theta_t"].astype(f32).T,
                               params["w_side_t"].astype(f32).T], axis=1)
    w_heads = jnp.pad(w_heads, ((0, 0), (0, PACK - N_HEAD_COLS)))
    b_heads = jnp.concatenate([params["b_fc"].astype(f32),
                               params["b_theta"].astype(f32),
                               params["b_side"].astype(f32)], axis=1)
    b_heads = jnp.pad(b_heads, ((0, 0), (0, PACK - N_HEAD_COLS)))

    const = lambda i, j: (0, 0)                    # weights stay VMEM-resident across grid steps

    # Explicit scoped-VMEM budget: 2x double-buffered image block + resident weights + out block.
    weight_bytes = (tile_bc * F + F * PACK + F + PACK) * 4
    vmem_needed = (2 * tile_bc * hw_blk * itemsize + 2 * weight_bytes
                   + 2 * tile_b * PACK * 4 + tile_bc * 4 + (2 << 20))
    vmem_limit = int(min(48 << 20, max(32 << 20, vmem_needed)))   # <=48 MiB keeps v7x headroom

    img_bytes = BC * HW * itemsize
    out_bytes = n_btiles * tile_b * PACK * 4
    cost = pl.CostEstimate(
        flops=int(n_btiles * tile_bc * HW
                  + n_btiles * (2 * tile_b * tile_bc * F + 2 * tile_b * F * PACK)),
        transcendentals=int(n_btiles * tile_b * PACK),
        bytes_accessed=int(img_bytes + weight_bytes + out_bytes))

    batch_sem = pltpu.CORE_PARALLEL if core_parallel else "parallel"

    out = pl.pallas_call(
        _make_kernel(C, BC, tile_bc, ragged_rows),
        out_shape=jax.ShapeDtypeStruct((n_btiles, tile_b, PACK), f32),
        grid_spec=pltpu.PrefetchScalarGridSpec(
            num_scalar_prefetch=0,
            grid=(n_btiles, n_hw),                 # (batch tiles, HW reduction) — reduction last
            in_specs=[
                pl.BlockSpec((tile_bc, hw_blk), lambda i, j: (i, j)),
                pl.BlockSpec((tile_bc, F), const),
                pl.BlockSpec((1, F), const),
                pl.BlockSpec((F, PACK), const),
                pl.BlockSpec((1, PACK), const),
            ],
            out_specs=pl.BlockSpec((1, tile_b, PACK), lambda i, j: (i, 0, 0)),
            scratch_shapes=[pltpu.VMEM((tile_bc, 1), jnp.float32)],
        ),
        compiler_params=pltpu.CompilerParams(
            dimension_semantics=(batch_sem, "arbitrary"),
            vmem_limit_bytes=vmem_limit),
        cost_estimate=cost,
    )(img2d, w_exp, b_base, w_heads, b_heads)

    return out.reshape(n_btiles * tile_b, PACK)[:B]


def similarity_net_forward(image1, image2, params, **kw):
    """SimilarityNet.forward(image1, image2) -> 6 outputs.

    Two independent pallas_calls (no jnp.concatenate of the image tensors — that would add a full
    HBM read+write of both streams before a read-bound kernel)."""
    p1 = _simnet_packed(image1, params, **kw)
    p2 = _simnet_packed(image2, params, **kw)

    def split(p):
        return (p[:, :OUTPUT_DIM],
                p[:, OUTPUT_DIM:OUTPUT_DIM + 1],
                p[:, OUTPUT_DIM + 1:N_HEAD_COLS])

    f1, t1, s1 = split(p1)
    f2, t2, s2 = split(p2)
    return f1, f2, t1, t2, s1, s2


def calc_feature(image, params, **kw):
    """SimilarityNet.calc_feature: split/forward/concat == one full-batch pass."""
    assert image.ndim == 4, "image shape should be (batch, channel, height, width)"
    packed = _simnet_packed(image, params, **kw)
    return (packed[:, :OUTPUT_DIM],
            packed[:, OUTPUT_DIM:OUTPUT_DIM + 1],
            packed[:, OUTPUT_DIM + 1:N_HEAD_COLS])


def _reference(image, params):
    """Pure-JAX reference of the same computation (mirrors the PyTorch forward)."""
    B, C, H, W = image.shape
    x = image.reshape(B, C, H * W).astype(jnp.float32)
    pooled = jnp.mean(x, axis=-1)
    feat = jnp.maximum(pooled @ params["w_base"] + params["b_base"], 0.0)
    f = jnp.tanh(feat @ params["w_fc"] + params["b_fc"])
    t = jnp.tanh(feat @ params["w_theta_t"].T + params["b_theta"])
    s = feat @ params["w_side_t"].T + params["b_side"]   # forward() applies NO softmax to side
    return f, t, s


def make_params(key, channels):
    ks = jax.random.split(key, 10)
    s = 0.1
    return {
        "w_base":    jax.random.normal(ks[0], (channels, IN_FEATURES), jnp.float32) * s,
        "b_base":    jax.random.normal(ks[1], (1, IN_FEATURES), jnp.float32) * s,
        "w_fc":      jax.random.normal(ks[2], (IN_FEATURES, OUTPUT_DIM), jnp.float32) * s,
        "b_fc":      jax.random.normal(ks[3], (1, OUTPUT_DIM), jnp.float32) * s,
        "w_theta_t": jax.random.normal(ks[4], (1, IN_FEATURES), jnp.float32) * s,
        "b_theta":   jax.random.normal(ks[5], (1, 1), jnp.float32) * s,
        "w_side_t":  jax.random.normal(ks[6], (2, IN_FEATURES), jnp.float32) * s,
        "b_side":    jax.random.normal(ks[7], (1, 2), jnp.float32) * s,
    }


if __name__ == "__main__":
    key = jax.random.PRNGKey(0)
    k_params, k_img, k_img2 = jax.random.split(key, 3)

    B, C, H, W = 4, 4, 16, 16
    params = make_params(k_params, C)
    image = jax.random.normal(k_img, (B, C, H, W), jnp.float32)

    def check(out, ref, atol=1e-5):
        for o, r in zip(out, ref):
            assert o.shape == r.shape, (o.shape, r.shape)
            assert jnp.allclose(o, r, atol=atol, rtol=1e-5), float(jnp.max(jnp.abs(o - r)))

    ref = _reference(image, params)

    # 1) Default tiling (single batch tile, single full-extent HW chunk).
    out = calc_feature(image, params)
    jax.block_until_ready(out)
    check(out, ref)

    # 2) Forced multi batch-tile / multi HW-chunk path (grid (2, 2), no padding needed).
    out = calc_feature(image, params, hw_chunk=128, max_rows=8)
    jax.block_until_ready(out)
    check(out, ref)

    # 3) Ragged last batch tile handled by the in-kernel row mask (no wrapper-side jnp.pad).
    img_r = jax.random.normal(k_img2, (3, C, H, W), jnp.float32)
    out_r = calc_feature(img_r, params, hw_chunk=128, max_rows=8)
    jax.block_until_ready(out_r)
    check(out_r, _reference(img_r, params))

    # 4) 6-output forward() path (two pallas_calls, no concatenate of the image tensors).
    x1, x2, t1, t2, s1, s2 = similarity_net_forward(image[:2], image[2:], params, hw_chunk=128)
    jax.block_until_ready((x1, x2, t1, t2, s1, s2))
    rf, rt, rs = ref
    check((jnp.concatenate([x1, x2]), jnp.concatenate([t1, t2]), jnp.concatenate([s1, s2])),
          (rf, rt, rs))

    # 5) bf16 image stream (halves the dominant HBM read; kernel accumulates in f32).
    img_bf = image.astype(jnp.bfloat16)
    out_bf = calc_feature(img_bf, params)
    jax.block_until_ready(out_bf)
    check(out_bf, _reference(img_bf.astype(jnp.float32), params), atol=1e-3)

    print("KERNEL_OK")
</pallas_src>

<mosaic_0001>
module attributes {stable_mosaic.version = 11 : i64} {
  func.func @kernel(%arg0: i32, %arg1: i32, %arg2: memref<16x256xf32, #tpu.memory_space<vmem>>, %arg3: memref<16x32xf32, #tpu.memory_space<vmem>>, %arg4: memref<1x32xf32, #tpu.memory_space<vmem>>, %arg5: memref<32x256xf32, #tpu.memory_space<vmem>>, %arg6: memref<1x256xf32, #tpu.memory_space<vmem>>, %arg7: memref<1x4x256xf32, #tpu.memory_space<vmem>>, %arg8: memref<16x1xf32, #tpu.memory_space<vmem>>) attributes {dimension_semantics = [#tpu.dimension_semantics<parallel>, #tpu.dimension_semantics<arbitrary>], iteration_bounds = array<i64: 1, 1>, scalar_prefetch = 0 : i64, scratch_operands = 1 : i64, tpu.core_type = #tpu.core_type<tc>, window_params = [{transform_indices = @transform_0, window_bounds = array<i64: 16, 256>}, {pipeline_mode = #tpu.pipeline_mode<synchronous>, transform_indices = @transform_1, window_bounds = array<i64: 16, 32>}, {pipeline_mode = #tpu.pipeline_mode<synchronous>, transform_indices = @transform_2, window_bounds = array<i64: 1, 32>}, {pipeline_mode = #tpu.pipeline_mode<synchronous>, transform_indices = @transform_3, window_bounds = array<i64: 32, 256>}, {pipeline_mode = #tpu.pipeline_mode<synchronous>, transform_indices = @transform_4, window_bounds = array<i64: 1, 256>}, {transform_indices = @transform_5, window_bounds = array<i64: 1, 4, 256>}]} {
    %c0_i32 = arith.constant 0 : i32
    %0 = arith.cmpi eq, %arg1, %c0_i32 : i32
    %1 = arith.extui %0 : i1 to i32
    %c0_i32_0 = arith.constant 0 : i32
    %2 = arith.cmpi ne, %1, %c0_i32_0 : i32
    scf.if %2 {
      %cst_8 = arith.constant 0.000000e+00 : f32
      %12 = vector.broadcast %cst_8 : f32 to vector<16x1xf32>
      %c0_9 = arith.constant 0 : index
      %c0_10 = arith.constant 0 : index
      %13 = vector.load %arg8[%c0_9, %c0_10] : memref<16x1xf32, #tpu.memory_space<vmem>>, vector<16x1xf32>
      tpu.vector_store %arg8[%c0_9, %c0_10], %12 {strides = array<i32>} : memref<16x1xf32, #tpu.memory_space<vmem>>, vector<16x1xf32>,
    } else {
    }
    %c0 = arith.constant 0 : index
    %c0_1 = arith.constant 0 : index
    %3 = vector.load %arg2[%c0, %c0_1] : memref<16x256xf32, #tpu.memory_space<vmem>>, vector<16x256xf32>
    %c0_2 = arith.constant 0 : index
    %c0_3 = arith.constant 0 : index
    %4 = vector.load %arg8[%c0_2, %c0_3] : memref<16x1xf32, #tpu.memory_space<vmem>>, vector<16x1xf32>
    %cst = arith.constant dense<0.000000e+00> : vector<16xf32>
    %5 = vector.multi_reduction <add>, %3, %cst [1] : vector<16x256xf32> to vector<16xf32>
    %6 = vector.shape_cast %5 : vector<16xf32> to vector<16x1xf32>
    %7 = arith.addf %4, %6 : vector<16x1xf32>
    %c0_4 = arith.constant 0 : index
    %c0_5 = arith.constant 0 : index
    %8 = vector.load %arg8[%c0_4, %c0_5] : memref<16x1xf32, #tpu.memory_space<vmem>>, vector<16x1xf32>
    tpu.vector_store %arg8[%c0_4, %c0_5], %7 {strides = array<i32>} : memref<16x1xf32, #tpu.memory_space<vmem>>, vector<16x1xf32>,
    %c0_i32_6 = arith.constant 0 : i32
    %9 = arith.cmpi eq, %arg1, %c0_i32_6 : i32
    %10 = arith.extui %9 : i1 to i32
    %c0_i32_7 = arith.constant 0 : i32
    %11 = arith.cmpi ne, %10, %c0_i32_7 : i32
    scf.if %11 {
      %c0_8 = arith.constant 0 : index
      %c0_9 = arith.constant 0 : index
      %12 = vector.load %arg8[%c0_8, %c0_9] : memref<16x1xf32, #tpu.memory_space<vmem>>, vector<16x1xf32>
      %c0_10 = arith.constant 0 : index
      %c0_11 = arith.constant 0 : index
      %13 = vector.load %arg3[%c0_10, %c0_11] : memref<16x32xf32, #tpu.memory_space<vmem>>, vector<16x32xf32>
      %14 = vector.broadcast %12 : vector<16x1xf32> to vector<16x32xf32>
      %15 = arith.mulf %14, %13 : vector<16x32xf32>
      %16 = tpu.iota {dimensions = array<i32: 0>} : vector<4x16xi32>
      %17 = tpu.iota {dimensions = array<i32: 1>} : vector<4x16xi32>
      %c4_i32 = arith.constant 4 : i32
      %18 = vector.broadcast %c4_i32 : i32 to vector<4x16xi32>
      %19 = arith.muli %16, %18 : vector<4x16xi32>
      %20 = arith.cmpi sge, %17, %19 : vector<4x16xi32>
      %c1_i32 = arith.constant 1 : i32
      %21 = vector.broadcast %c1_i32 : i32 to vector<4x16xi32>
      %22 = arith.addi %16, %21 : vector<4x16xi32>
      %c4_i32_12 = arith.constant 4 : i32
      %23 = vector.broadcast %c4_i32_12 : i32 to vector<4x16xi32>
      %24 = arith.muli %22, %23 : vector<4x16xi32>
      %25 = arith.cmpi slt, %17, %24 : vector<4x16xi32>
      %26 = arith.andi %20, %25 : vector<4x16xi1>
      %27 = arith.extui %26 : vector<4x16xi1> to vector<4x16xi32>
      %28 = arith.sitofp %27 : vector<4x16xi32> to vector<4x16xf32>
      %cst_13 = arith.constant dense<0.000000e+00> : vector<4x32xf32>
      %29 = tpu.matmul %28, %15, %cst_13 {dimension_numbers = #tpu.dot_dimension_numbers<[1], [0], [0], [1], [0, 0, 1, 1], [], []>} : vector<4x16xf32>, vector<16x32xf32>, vector<4x32xf32> -> vector<4x32xf32>
      %c0_14 = arith.constant 0 : index
      %c0_15 = arith.constant 0 : index
      %30 = vector.load %arg4[%c0_14, %c0_15] : memref<1x32xf32, #tpu.memory_space<vmem>>, vector<1x32xf32>
      %31 = vector.broadcast %30 : vector<1x32xf32> to vector<4x32xf32>
      %32 = arith.addf %29, %31 : vector<4x32xf32>
      %cst_16 = arith.constant 0.000000e+00 : f32
      %33 = vector.broadcast %cst_16 : f32 to vector<4x32xf32>
      %34 = arith.maximumf %32, %33 : vector<4x32xf32>
      %c0_17 = arith.constant 0 : index
      %c0_18 = arith.constant 0 : index
      %35 = vector.load %arg5[%c0_17, %c0_18] : memref<32x256xf32, #tpu.memory_space<vmem>>, vector<32x256xf32>
      %cst_19 = arith.constant dense<0.000000e+00> : vector<4x256xf32>
      %36 = tpu.matmul %34, %35, %cst_19 {dimension_numbers = #tpu.dot_dimension_numbers<[1], [0], [0], [1], [0, 0, 1, 1], [], []>} : vector<4x32xf32>, vector<32x256xf32>, vector<4x256xf32> -> vector<4x256xf32>
      %c0_20 = arith.constant 0 : index
      %c0_21 = arith.constant 0 : index
      %37 = vector.load %arg6[%c0_20, %c0_21] : memref<1x256xf32, #tpu.memory_space<vmem>>, vector<1x256xf32>
      %38 = vector.broadcast %37 : vector<1x256xf32> to vector<4x256xf32>
      %39 = arith.addf %36, %38 : vector<4x256xf32>
      %40 = tpu.iota {dimensions = array<i32: 1>} : vector<4x256xi32>
      %c129_i32 = arith.constant 129 : i32
      %41 = vector.broadcast %c129_i32 : i32 to vector<4x256xi32>
      %42 = arith.cmpi slt, %40, %41 : vector<4x256xi32>
      %43 = math.tanh %39 : vector<4x256xf32>
      %44 = arith.select %42, %43, %39 : vector<4x256xi1>, vector<4x256xf32>
      %c0_22 = arith.constant 0 : index
      %c0_23 = arith.constant 0 : index
      %c0_24 = arith.constant 0 : index
      %45 = vector.load %arg7[%c0_22, %c0_23, %c0_24] : memref<1x4x256xf32, #tpu.memory_space<vmem>>, vector<1x4x256xf32>
      %46 = vector.shape_cast %45 : vector<1x4x256xf32> to vector<4x256xf32>
      %47 = vector.shape_cast %44 : vector<4x256xf32> to vector<1x4x256xf32>
      tpu.vector_store %arg7[%c0_22, %c0_23, %c0_24], %47 {strides = array<i32>} : memref<1x4x256xf32, #tpu.memory_space<vmem>>, vector<1x4x256xf32>,
    } else {
    }
    return
  }
  func.func @transform_0(%arg0: i32, %arg1: i32) -> (i32, i32) {
    %c0_i32 = arith.constant 0 : i32
    return %arg0, %arg1 : i32, i32
  }
  func.func @transform_1(%arg0: i32, %arg1: i32) -> (i32, i32) {
    %c0_i32 = arith.constant 0 : i32
    %c0_i32_0 = arith.constant 0 : i32
    %c0_i32_1 = arith.constant 0 : i32
    return %c0_i32, %c0_i32_0 : i32, i32
  }
  func.func @transform_2(%arg0: i32, %arg1: i32) -> (i32, i32) {
    %c0_i32 = arith.constant 0 : i32
    %c0_i32_0 = arith.constant 0 : i32
    %c0_i32_1 = arith.constant 0 : i32
    return %c0_i32, %c0_i32_0 : i32, i32
  }
  func.func @transform_3(%arg0: i32, %arg1: i32) -> (i32, i32) {
    %c0_i32 = arith.constant 0 : i32
    %c0_i32_0 = arith.constant 0 : i32
    %c0_i32_1 = arith.constant 0 : i32
    return %c0_i32, %c0_i32_0 : i32, i32
  }
  func.func @transform_4(%arg0: i32, %arg1: i32) -> (i32, i32) {
    %c0_i32 = arith.constant 0 : i32
    %c0_i32_0 = arith.constant 0 : i32
    %c0_i32_1 = arith.constant 0 : i32
    return %c0_i32, %c0_i32_0 : i32, i32
  }
  func.func @transform_5(%arg0: i32, %arg1: i32) -> (i32, i32, i32) {
    %c0_i32 = arith.constant 0 : i32
    %c0_i32_0 = arith.constant 0 : i32
    %c0_i32_1 = arith.constant 0 : i32
    return %arg0, %c0_i32, %c0_i32_0 : i32, i32, i32
  }
}

</mosaic_0001>

<bundles_post_ra>
// kernel: tpu_custom_call.1
= control target key start
LH: loop header
LB: loop body
LE: loop exit
PB: predicated region body
PF: predicated region fallthrough
CT: control target
= control target key end

     0   :  { %10 = vsyncpa [#allocation4], 0  ;;  %s427_s0 = inlined_call_operand.hbm [shape: f32[16,256], index: 0, kind: input, shape index: {}]   ;;  %s428_s1 = inlined_call_operand.hbm [shape: f32[16,32], index: 1, kind: input, shape index: {}]   ;;  %s429_s2 = inlined_call_operand.vmem [shape: f32[1,32], index: 2, kind: input, shape index: {}]   ;;  %s430_s3 = inlined_call_operand.hbm [shape: f32[32,256], index: 3, kind: input, shape index: {}]   ;;  %s431_s4 = inlined_call_operand.vmem [shape: f32[1,256], index: 4, kind: input, shape index: {}]   ;;  %s432_s5 = inlined_call_operand.hbm [shape: f32[1,4,256], index: 5, kind: output, shape index: {}]  }
   0x1   :  { %11 = vsyncpa [#allocation7], 0  ;;  %s30_s20 = sshll.u32 %s428_s1, 4  ;;  %s31_s20 = int_to_ptr.hbm [resolvable:$true] %s30_s20 }
   0x2   :  { %12 = vsyncpa [#allocation5], 0  ;;  %s365_s21 = smov [#allocation6]   ;;  %s17_s25 = sshll.u32 %s427_s0, 4  ;;  %s18_s25 = int_to_ptr.hbm [resolvable:$true] %s17_s25 }
   0x3   :  { %s32_s22 = sshll.u32 %s365_s21, 4  ;;  %s366_s26 = smov 128   ;;  %s33_s22 = int_to_ptr.vmem [resolvable:$true] %s32_s22 }
   0x4   :  { %s367_s27 = smov 8   ;;  %s368_s28 = smov [#allocation3]  }
   0x5   :  { %38 = dma.hbm_to_vmem [thread:$0]  %s31_s20, 256, %s33_s22, [#allocation7], %s366_s26, %s366_s26, %s367_s27  }
   0x6   :  { %s19_s29 = sshll.u32 %s368_s28, 4  ;;  %s369_s30 = smov 256   ;;  %s20_s29 = int_to_ptr.vmem [resolvable:$true] %s19_s29 }
   0x7   :  { %s370_s6 = smov 16   ;;  %s45_s8 = sshll.u32 %s430_s3, 4  ;;  %s46_s8 = int_to_ptr.hbm [resolvable:$true] %s45_s8 }
   0x8   :  { %25 = dma.hbm_to_vmem [thread:$0]  %s18_s25, 512, %s20_s29, [#allocation4], %s369_s30, %s369_s30, %s370_s6  }
   0x9   :  { %s371_s9 = smov [#allocation8]  }
   0xa   :  { %s47_s10 = sshll.u32 %s371_s9, 4  ;;  %s48_s10 = int_to_ptr.vmem [resolvable:$true] %s47_s10 }
   0xb   :  { %53 = dma.hbm_to_vmem [thread:$0]  %s46_s8, 1024, %s48_s10, [#allocation7], %s369_s30, %s369_s30, %s370_s6  }
   0xc   :  { %359 = dma.done.wait [#allocation4], 512  }
   0xd   :  { %360 = vsyncadd [#allocation4], 4294966784 }
   0xe   :  { %361 = dma.done.wait [#allocation7], 1280  }
   0xf   :  { %362 = vsyncadd [#allocation7], 4294966016  ;;  %vm72_vm0 = vcmask 7168   ;;  %v372_v0 = vmov 0.0   ;;  %v77_v1 = vld [vmem:[#allocation3 + $0x10] sm:$0xff]  ;;  %v78_v2 = vld [vmem:[#allocation3 + $0x18] sm:$0xff]  ;;  %v111_v18 = vlaneseq }
  0x10   :  { %74 = vst.msk [vmem:[#allocation2 + $0x8] sm:$0xff] %vm72_vm0, %v372_v0  ;;  %v84_v3 = vadd.f32 %v78_v2, %v77_v1  ;;  %v75_v4 = vld [vmem:[#allocation3] sm:$0xff]  ;;  %v76_v5 = vld [vmem:[#allocation3 + $0x8] sm:$0xff]  ;;  %v373_v7 = vmov 0   ;;  %vm127_vm4 = vcmask 130048   ;;  %v156_v31 = vld [vmem:[#allocation8 + $0x20] sm:$0xff] }
  0x11   :  { %73 = vst.msk [vmem:[#allocation2] sm:$0xff] %vm72_vm0, %v372_v0  ;;  %v81_v6 = vadd.f32 %v76_v5, %v75_v4  ;;  %256 = vset.pattern.permute.xlu1 %v373_v7  ;;  %257 = vset.pattern.permute.xlu0 %v373_v7  ;;  %v158_v16 = vld [vmem:[#allocation8 + $0x30] sm:$0xff]  ;;  %v159_v17 = vld [vmem:[#allocation8 + $0x38] sm:$0xff]  ;;  %v112_v19 = vshrl.u32 %v111_v18, 7  ;;  %v114_v22 = vand.u32 127, %v111_v18  ;;  %v157_v32 = vld [vmem:[#allocation8 + $0x28] sm:$0xff] }
  0x12   :  { %85 = vadd.xlane.f32.xlu0 %v84_v3  ;;  %182 = vmatpush.msra.mxu1 %v158_v16  ;;  %v98_v21 = vld [vmem:[#allocation6 + $0x8] sm:$0xff]  ;;  %v97_v27 = vld [vmem:[#allocation6] sm:$0xff]  ;;  %v152_v35 = vld [vmem:[#allocation8] sm:$0xff]  ;;  %vm166_vm5 = vcmask 261120   ;;  %s231_s16 = sshll.u32 %s432_s5, 4  ;;  %vm220_vm7 = vcmask 1043456   ;;  %s232_s16 = int_to_ptr.hbm [resolvable:$true] %s231_s16 }
  0x13   :  { %202 = vmatpush.msra.mxu2 %v159_v17  ;;  %v117_v20 = vadd.s32 1, %v112_v19  ;;  %v115_v23 = vmul.u32 4, %v112_v19  ;;  %v154_v33 = vld [vmem:[#allocation8 + $0x10] sm:$0xff]  ;;  %v155_v34 = vld [vmem:[#allocation8 + $0x18] sm:$0xff]  ;;  %v153_v36 = vld [vmem:[#allocation8 + $0x8] sm:$0xff]  ;;  %v210_v48 = vadd.s32 128, %v114_v22 }
  0x14   :  { %183 = vmatpush.msra.mxu1 %v156_v31  ;;  %v258_v37 = vld [vmem:[%s429_s2] ss:$0 sm:$0xff]  ;;  %s374_s2 = smov [#allocation9]  }
  0x15   :  { %v118_v24 = vmul.u32 4, %v117_v20  ;;  %vm116_vm1 = vcmp.ge.s32.totalorder %v114_v22, %v115_v23  ;;  %203 = vmatpush.msra.mxu2 %v157_v32  ;;  %v160_v41 = vld [vmem:[%s431_s4] sm:$0x3]  ;;  %vm212_vm6 = vcmp.lt.s32.totalorder %v210_v48, 129  ;;  %s229_s13 = sshll.u32 %s374_s2, 4  ;;  %s230_s13 = int_to_ptr.vmem [resolvable:$true] %s229_s13 }
  0x16   :  { %184 = vmatpush.msra.mxu1 %v154_v33  ;;  %v163_v42 = vperm.slane %v160_v41, 1  ;;  %v162_v43 = vperm.slane %v160_v41, 0 }
  0x17   :  { %v80_v8 = vld [vmem:[#allocation2 + $0x8] sm:$0xff]  ;;  %vm119_vm2 = vcmp.lt.s32.totalorder %v114_v22, %v118_v24  ;;  %204 = vmatpush.msra.mxu2 %v155_v34 }
  0x18   :  { %v79_v11 = vld [vmem:[#allocation2] sm:$0xff]  ;;  %vm120_vm3 = vmand %vm116_vm1, %vm119_vm2  ;;  %185 = vmatpush.msra.mxu1 %v152_v35 }
  0x19   :  { %v242_v30 = vsel %vm120_vm3, 1.0, %v372_v0  ;;  %205 = vmatpush.msra.mxu2 %v153_v36 }
  0x1a   :  { %82 = vadd.xlane.f32.xlu0 %v81_v6 }
  0x85   :  { %v86_v9 = vpop.xlane.xlu0 %85 }
  0x86   :  { %v88_v10 = vadd.f32 %v86_v9, %v80_v8 }
  0x88   :  { %91 = vst.msk [vmem:[#allocation2 + $0x8] sm:$0xff] %vm72_vm0, %v88_v10 }
  0x8d   :  { %v83_v12 = vpop.xlane.xlu0 %82 }
  0x8e   :  { %v87_v13 = vadd.f32 %v83_v12, %v79_v11 }
  0x8f   :  { %v96_v14 = vld [vmem:[#allocation2 + $0x8] sm:$0xff] }
  0x90   :  { %90 = vst.msk [vmem:[#allocation2] sm:$0xff] %vm72_vm0, %v87_v13  ;;  %106 = vperm.xlu1 %256, %v96_v14  }
  0x97   :  { %v95_v15 = vld [vmem:[#allocation2] sm:$0xff] }
  0x98   :  { %101 = vperm.xlu1 %256, %v95_v15  }
 0x102   :  { %v107_v25 = vpop.permute.xlu1 %106 }
 0x103   :  { %v110_v26 = vmul.f32 %v107_v25, %v98_v21 }
 0x105   :  { %145 = vmatpush.msra.mxu0 %v110_v26 }
 0x10a   :  { %v102_v28 = vpop.permute.xlu1 %101 }
 0x10b   :  { %v109_v29 = vmul.f32 %v102_v28, %v97_v27 }
 0x10d   :  { %146 = vmatpush.msra.mxu0 %v109_v29 }
 0x10e   :  { %243 = vmatmul.msk.f32.vlgmr.msra.gmra.mxu0 %vm127_vm4, %v242_v30 }
 0x18b   :  { %v148_v38 = vpop.f32.mrf.mxu0 }
 0x18c   :  { %v149_v39 = vadd.f32 %v258_v37, %v148_v38 }
 0x18e   :  { %v151_v40 = vmax.f32 %v149_v39, 0.0 }
 0x190   :  { %244 = vmatmul.msk.f32.vlgmr.msra.gmra.mxu1 %vm166_vm5, %v151_v40  ;;  %245 = vmatmul.msk.f32.vlgmr.msra.gmra.mxu2 %vm166_vm5, %v151_v40 }
 0x20d   :  { %v187_v44 = vpop.f32.mrf.mxu1 }
 0x20e   :  { %v188_v47 = vadd.f32 %v187_v44, %v162_v43 }
 0x213   :  { %v207_v45 = vpop.f32.mrf.mxu2 }
 0x214   :  { %v208_v46 = vadd.f32 %v207_v45, %v163_v42 }
 0x216   :  { %259 = vtanh.f32 %v208_v46 }
 0x217   :  { %261 = vtanh.f32 %v188_v47 }
 0x21c   :  { %v260_v49 = vpop.eup %259 }
 0x21d   :  { %v216_v50 = vsel %vm212_vm6, %v260_v49, %v208_v46  ;;  %v262_v52 = vpop.eup %261 }
 0x21e   :  { %v219_v51 = vrot.slane %v216_v50, 4 }
 0x220   :  { %v221_v53 = vsel %vm220_vm7, %v262_v52, %v219_v51 }
 0x221   :  { %223 = vst [vmem:[#allocation9] sm:$0xff] %v221_v53 }
 0x222   :  { %234 = dma.vmem_to_hbm [thread:$0]  %s230_s13, 128, %s232_s16, [#allocation5]  }
 0x223   :  { %363 = dma.done.wait [#allocation5], 128  }
 0x224   :  { %364 = vsyncadd [#allocation5], 4294967168 }
 0x225   :  { %239 = vsyncpa [#allocation4], 1 }
 0x226   :  { %240 = vsyncpa [#allocation7], 1 }
 0x227   :  { %241 = vsyncpa [#allocation5], 1 }

</bundles_post_ra>
